<compile_context>
chip_gen: v5e
topology: v5e:2x2
jax: 0.10.0
libtpu: 0.0.40
codegen_flags: <defaults>
</compile_context>

<pallas_src>
import math

import jax
import jax.numpy as jnp
from jax.experimental import pallas as pl
from jax.experimental.pallas import tpu as pltpu


def _round_up(x, m):
    return ((x + m - 1) // m) * m


# ------------------------------ Pallas kernels ------------------------------

def _xw_kernel(x_ref, w_ref, xw_ref):
    """One row-tile of the fused feature transform: XW = X @ [W_mu || W_logstd]."""
    xw_ref[...] = jnp.dot(
        x_ref[...], w_ref[...], preferred_element_type=jnp.float32
    ).astype(xw_ref.dtype)


def _prop_kernel(a_ref, xw_ref, b_ref, out_ref, acc_ref):
    """K-tiled propagation for both heads: OUT = A_hat @ XW + b."""
    k = pl.program_id(1)

    @pl.when(k == 0)
    def _():
        acc_ref[...] = jnp.zeros_like(acc_ref)

    acc_ref[...] += jnp.dot(
        a_ref[...], xw_ref[...], preferred_element_type=jnp.float32
    )

    @pl.when(k == pl.num_programs(1) - 1)
    def _():
        out_ref[...] = acc_ref[...] + b_ref[...]   # bias [1, Kpad] broadcasts, f32


# ------------------------------ JAX glue ------------------------------------

def _normalized_adjacency(edge_index, num_nodes):
    """Dense D^-1/2 (A + I) D^-1/2 with GCNConv (source->target) semantics."""
    src = edge_index[0]
    dst = edge_index[1]
    a = jnp.zeros((num_nodes, num_nodes), jnp.float32)
    a = a.at[dst, src].add(1.0)                    # duplicate edges accumulate (PyG semantics)
    a = a + jnp.eye(num_nodes, dtype=jnp.float32)  # self loops
    deg = a.sum(axis=1)
    dinv = jnp.where(deg > 0, 1.0 / jnp.sqrt(deg), 0.0)
    return dinv[:, None] * a * dinv[None, :]


def _normalized_adjacency_padded_bf16(edge_index, num_nodes, n_pad):
    """Normalized adjacency built directly into its zero-padded bf16 form."""
    src = edge_index[0]
    dst = edge_index[1]
    a = jnp.zeros((n_pad, n_pad), jnp.float32)
    a = a.at[dst, src].add(1.0)
    self_loops = jnp.zeros((n_pad,), jnp.float32).at[:num_nodes].set(1.0)
    a = a + jnp.diag(self_loops)                   # self loops only for real nodes
    deg = a.sum(axis=1)                            # padded rows/cols have deg 0
    dinv = jnp.where(deg > 0, 1.0 / jnp.sqrt(deg), 0.0)
    return (dinv[:, None] * a * dinv[None, :]).astype(jnp.bfloat16)


def _vmem_capacity_bytes():
    try:
        info = pltpu.get_tpu_info()
        return int(getattr(info, "vmem_capacity_bytes", 64 * 1024 * 1024))
    except Exception:
        return 64 * 1024 * 1024   # conservative (v7x per-TC)


def variational_linear_encoder(x, edge_index, params, *, row_tile=256, col_tile=512):
    """Forward of VariationalLinearEncoder: returns (mu, logstd)."""
    n, fin = x.shape
    fout = params["w_mu"].shape[1]
    k = 2 * fout

    # ---- fuse heads + pad to lane-dense / MXU-friendly shapes
    w_cat = jnp.concatenate([params["w_mu"], params["w_logstd"]], axis=1)  # [Fin, 2*Fout]
    b_cat = jnp.concatenate([params["b_mu"], params["b_logstd"]], axis=1)  # [1, 2*Fout]

    k_pad = _round_up(k, 128)
    fin_pad = _round_up(fin, 128)

    # Tile sizes: never shrink below the requested tile unless the graph itself is
    # smaller; pad N up so the tiles always divide it exactly.
    n_128 = _round_up(n, 128)
    tm = row_tile if n_128 >= row_tile else n_128       # row tile (rows of A / output)
    tk = col_tile if n_128 >= col_tile else n_128       # reduction tile (cols of A)
    n_pad = _round_up(n_128, math.lcm(tm, tk))

    a_pad = _normalized_adjacency_padded_bf16(edge_index, n, n_pad)
    x_pad = jnp.pad(x.astype(jnp.float32),
                    ((0, n_pad - n), (0, fin_pad - fin))).astype(jnp.bfloat16)
    w_pad = jnp.pad(w_cat, ((0, fin_pad - fin), (0, k_pad - k))).astype(jnp.bfloat16)
    b_pad = jnp.pad(b_cat, ((0, 0), (0, k_pad - k))).astype(jnp.float32)

    # ---- generation-aware scoped-VMEM sizing (exact tile accounting, no double count)
    prop_bytes = (2 * tm * tk * 2            # A tile, bf16, double-buffered
                  + 2 * tk * k_pad * 2       # XW tile, bf16, double-buffered
                  + 1 * k_pad * 4            # bias, single-buffered (Buffered(1))
                  + 2 * tm * k_pad * 4       # f32 output tile, double-buffered
                  + tm * k_pad * 4)          # f32 accumulator scratch
    xw_bytes = (2 * tm * fin_pad * 2         # X tile, bf16, double-buffered
                + 1 * fin_pad * k_pad * 2    # W resident, single-buffered (Buffered(1))
                + 2 * tm * k_pad * 2)        # XW output tile, bf16, double-buffered
    needed = max(prop_bytes, xw_bytes) + (2 << 20)       # headroom
    vmem_cap = _vmem_capacity_bytes()
    vmem_limit = int(min(max(needed, 32 * 1024 * 1024), vmem_cap - 8 * 1024 * 1024))

    # ---- kernel 1: XW computed exactly once (row-tiled over nodes)
    xw = pl.pallas_call(
        _xw_kernel,
        out_shape=jax.ShapeDtypeStruct((n_pad, k_pad), jnp.bfloat16),
        grid_spec=pltpu.PrefetchScalarGridSpec(
            num_scalar_prefetch=0,
            grid=(n_pad // tm,),
            in_specs=[
                pl.BlockSpec((tm, fin_pad), lambda i: (i, 0)),
                pl.BlockSpec((fin_pad, k_pad), lambda i: (0, 0),
                             pipeline_mode=pl.Buffered(1)),    # grid-invariant
            ],
            out_specs=pl.BlockSpec((tm, k_pad), lambda i: (i, 0)),
        ),
        compiler_params=pltpu.CompilerParams(
            dimension_semantics=("parallel",),
            vmem_limit_bytes=vmem_limit,
        ),
    )(x_pad, w_pad)

    # ---- kernel 2: K-tiled propagation A_hat @ XW + b for both heads at once
    prop_cost = pl.CostEstimate(
        flops=2 * n_pad * n_pad * k_pad,
        transcendentals=0,
        bytes_accessed=n_pad * n_pad * 2 + n_pad * k_pad * (2 + 4) + k_pad * 4,
    )
    out = pl.pallas_call(
        _prop_kernel,
        out_shape=jax.ShapeDtypeStruct((n_pad, k_pad), jnp.float32),
        grid_spec=pltpu.PrefetchScalarGridSpec(
            num_scalar_prefetch=0,
            grid=(n_pad // tm, n_pad // tk),
            in_specs=[
                pl.BlockSpec((tm, tk), lambda i, kk: (i, kk)),       # A tile (pipelined)
                pl.BlockSpec((tk, k_pad), lambda i, kk: (kk, 0)),    # XW tile (pipelined)
                pl.BlockSpec((1, k_pad), lambda i, kk: (0, 0),
                             pipeline_mode=pl.Buffered(1)),          # bias, grid-invariant
            ],
            out_specs=pl.BlockSpec((tm, k_pad), lambda i, kk: (i, 0)),
            scratch_shapes=[pltpu.VMEM((tm, k_pad), jnp.float32)],
        ),
        compiler_params=pltpu.CompilerParams(
            dimension_semantics=("parallel", "arbitrary"),
            vmem_limit_bytes=vmem_limit,
        ),
        cost_estimate=prop_cost,
    )(a_pad, xw, b_pad)

    mu = out[:n, :fout]
    logstd = out[:n, fout:2 * fout]
    return mu, logstd


def init_params(key, in_channels, out_channels):
    """Deterministic synthetic init (GCNConv: weight glorot-like, bias zeros)."""
    k1, k2 = jax.random.split(key)
    scale = jnp.sqrt(6.0 / (in_channels + out_channels))
    return {
        "w_mu": jax.random.uniform(k1, (in_channels, out_channels),
                                   jnp.float32, -scale, scale),
        "b_mu": jnp.zeros((1, out_channels), jnp.float32),
        "w_logstd": jax.random.uniform(k2, (in_channels, out_channels),
                                       jnp.float32, -scale, scale),
        "b_logstd": jnp.zeros((1, out_channels), jnp.float32),
    }


# ------------------------------ references ----------------------------------

def _reference_f32(x, edge_index, params):
    a_hat = _normalized_adjacency(edge_index, x.shape[0])
    mu = a_hat @ (x @ params["w_mu"]) + params["b_mu"]
    ls = a_hat @ (x @ params["w_logstd"]) + params["b_logstd"]
    return mu, ls


def _reference_bf16(x, edge_index, params):
    """Reference that mimics the kernel's bf16-operand / f32-accumulate path."""
    n = x.shape[0]
    fout = params["w_mu"].shape[1]
    a = _normalized_adjacency(edge_index, n).astype(jnp.bfloat16)
    xb = x.astype(jnp.bfloat16)
    w = jnp.concatenate([params["w_mu"], params["w_logstd"]], 1).astype(jnp.bfloat16)
    b = jnp.concatenate([params["b_mu"], params["b_logstd"]], 1).astype(jnp.float32)
    xw = jnp.dot(xb, w, preferred_element_type=jnp.float32).astype(jnp.bfloat16)
    out = jnp.dot(a, xw, preferred_element_type=jnp.float32) + b
    return out[:, :fout], out[:, fout:2 * fout]


if __name__ == "__main__":
    key = jax.random.PRNGKey(0)
    k_x, k_e, k_p = jax.random.split(key, 3)

    num_nodes = 16
    in_channels = 32
    out_channels = 16
    num_edges = 40

    x = jax.random.normal(k_x, (num_nodes, in_channels), jnp.float32)
    # random directed edges with src != dst
    ks, kd = jax.random.split(k_e)
    src = jax.random.randint(ks, (num_edges,), 0, num_nodes)
    dst = (src + jax.random.randint(kd, (num_edges,), 1, num_nodes)) % num_nodes
    edge_index = jnp.stack([src, dst], axis=0).astype(jnp.int32)

    params = init_params(k_p, in_channels, out_channels)

    mu, logstd = variational_linear_encoder(x, edge_index, params)
    jax.block_until_ready((mu, logstd))

    assert mu.shape == (num_nodes, out_channels)
    assert logstd.shape == (num_nodes, out_channels)

    # Tight check vs a reference that uses the same bf16-operand math.
    bmu, bls = _reference_bf16(x, edge_index, params)
    assert jnp.allclose(mu, bmu, atol=2e-3, rtol=2e-3)
    assert jnp.allclose(logstd, bls, atol=2e-3, rtol=2e-3)

    # Looser sanity check vs the full-precision reference (bf16 operand rounding).
    fmu, fls = _reference_f32(x, edge_index, params)
    assert jnp.allclose(mu, fmu, atol=1e-1, rtol=1e-1)
    assert jnp.allclose(logstd, fls, atol=1e-1, rtol=1e-1)

    print("KERNEL_OK")
</pallas_src>

<mosaic_0001>
module attributes {stable_mosaic.version = 11 : i64} {
  func.func @_xw_kernel(%arg0: i32, %arg1: memref<128x128xbf16, #tpu.memory_space<vmem>>, %arg2: memref<128x128xbf16, #tpu.memory_space<vmem>>, %arg3: memref<128x128xbf16, #tpu.memory_space<vmem>>) attributes {dimension_semantics = [#tpu.dimension_semantics<parallel>], iteration_bounds = array<i64: 1>, scalar_prefetch = 0 : i64, scratch_operands = 0 : i64, tpu.core_type = #tpu.core_type<tc>, window_params = [{transform_indices = @transform_0, window_bounds = array<i64: 128, 128>}, {pipeline_mode = #tpu.pipeline_mode<synchronous>, transform_indices = @transform_1, window_bounds = array<i64: 128, 128>}, {transform_indices = @transform_2, window_bounds = array<i64: 128, 128>}]} {
    %c0 = arith.constant 0 : index
    %c0_0 = arith.constant 0 : index
    %0 = vector.load %arg1[%c0, %c0_0] : memref<128x128xbf16, #tpu.memory_space<vmem>>, vector<128x128xbf16>
    %c0_1 = arith.constant 0 : index
    %c0_2 = arith.constant 0 : index
    %1 = vector.load %arg2[%c0_1, %c0_2] : memref<128x128xbf16, #tpu.memory_space<vmem>>, vector<128x128xbf16>
    %cst = arith.constant dense<0.000000e+00> : vector<128x128xf32>
    %2 = tpu.matmul %0, %1, %cst {dimension_numbers = #tpu.dot_dimension_numbers<[1], [0], [0], [1], [0, 0, 1, 1], [], []>} : vector<128x128xbf16>, vector<128x128xbf16>, vector<128x128xf32> -> vector<128x128xf32>
    %3 = arith.truncf %2 : vector<128x128xf32> to vector<128x128xbf16>
    %c0_3 = arith.constant 0 : index
    %c0_4 = arith.constant 0 : index
    %4 = vector.load %arg3[%c0_3, %c0_4] : memref<128x128xbf16, #tpu.memory_space<vmem>>, vector<128x128xbf16>
    tpu.vector_store %arg3[%c0_3, %c0_4], %3 {strides = array<i32>} : memref<128x128xbf16, #tpu.memory_space<vmem>>, vector<128x128xbf16>,
    return
  }
  func.func @transform_0(%arg0: i32) -> (i32, i32) {
    %c0_i32 = arith.constant 0 : i32
    %c0_i32_0 = arith.constant 0 : i32
    return %arg0, %c0_i32 : i32, i32
  }
  func.func @transform_1(%arg0: i32) -> (i32, i32) {
    %c0_i32 = arith.constant 0 : i32
    %c0_i32_0 = arith.constant 0 : i32
    %c0_i32_1 = arith.constant 0 : i32
    return %c0_i32, %c0_i32_0 : i32, i32
  }
  func.func @transform_2(%arg0: i32) -> (i32, i32) {
    %c0_i32 = arith.constant 0 : i32
    %c0_i32_0 = arith.constant 0 : i32
    return %arg0, %c0_i32 : i32, i32
  }
}

</mosaic_0001>

<bundles_post_ra>
// kernel: tpu_custom_call.1
= control target key start
LH: loop header
LB: loop body
LE: loop exit
PB: predicated region body
PF: predicated region fallthrough
CT: control target
= control target key end

     0   :  { %7 = vsyncpa [#allocation3], 0  ;;  %s545_s0 = inlined_call_operand.hbm [shape: bf16[128,128], index: 0, kind: input, shape index: {}]   ;;  %s546_s1 = inlined_call_operand.hbm [shape: bf16[128,128], index: 1, kind: input, shape index: {}]   ;;  %s547_s2 = inlined_call_operand.hbm [shape: bf16[128,128], index: 2, kind: output, shape index: {}]  }
   0x1   :  { %8 = vsyncpa [#allocation6], 0 }
   0x2   :  { %9 = vsyncpa [#allocation4], 0  ;;  %s14_s11 = sshll.u32 %s545_s0, 4  ;;  %s507_s12 = smov [#allocation2]   ;;  %s15_s11 = int_to_ptr.hbm [resolvable:$true] %s14_s11 }
   0x3   :  { %s16_s13 = sshll.u32 %s507_s12, 4  ;;  %s27_s16 = sshll.u32 %s546_s1, 4  ;;  %s17_s13 = int_to_ptr.vmem [resolvable:$true] %s16_s13  ;;  %s28_s16 = int_to_ptr.hbm [resolvable:$true] %s27_s16 }
   0x4   :  { %s508_s17 = smov 64   ;;  %s509_s18 = smov 4  }
   0x5   :  { %22 = dma.hbm_to_vmem [thread:$0]  %s15_s11, 1024, %s17_s13, [#allocation3], %s508_s17, %s508_s17, %s509_s18  }
   0x6   :  { %s510_s19 = smov [#allocation5]  }
   0x7   :  { %s29_s20 = sshll.u32 %s510_s19, 4  ;;  %s30_s20 = int_to_ptr.vmem [resolvable:$true] %s29_s20 }
   0x8   :  { %35 = dma.hbm_to_vmem [thread:$0]  %s28_s16, 1024, %s30_s20, [#allocation6], %s508_s17, %s508_s17, %s509_s18  }
   0x9   :  { %501 = dma.done.wait [#allocation3], 1024  }
   0xa   :  { %502 = vsyncadd [#allocation3], 4294966272 }
   0xb   :  { %503 = dma.done.wait [#allocation6], 1024  }
   0xc   :  { %504 = vsyncadd [#allocation6], 4294966272  ;;  %v352_v0 = vld [vmem:[#allocation5 + $0x38] sm:$0xff]  ;;  %v351_v1 = vld [vmem:[#allocation5 + $0x30] sm:$0xff]  ;;  %s511_s0 = smov [#allocation7]   ;;  %s259_s23 = sshll.u32 %s547_s2, 4  ;;  %s260_s23 = int_to_ptr.hbm [resolvable:$true] %s259_s23 }
   0xd   :  { %172 = vmatpush.bf16.msra.mxu0 %v352_v0  ;;  %400 = vmatpush.bf16.msra.mxu1 %v352_v0  ;;  %v350_v2 = vld [vmem:[#allocation5 + $0x28] sm:$0xff]  ;;  %v349_v3 = vld [vmem:[#allocation5 + $0x20] sm:$0xff]  ;;  %v348_v4 = vld [vmem:[#allocation5 + $0x18] sm:$0xff]  ;;  %s257_s1 = sshll.u32 %s511_s0, 4  ;;  %s258_s1 = int_to_ptr.vmem [resolvable:$true] %s257_s1 }
   0xe   :  { %401 = vmatpush.bf16.msra.mxu2 %v352_v0  ;;  %402 = vmatpush.bf16.msra.mxu3 %v352_v0  ;;  %v347_v5 = vld [vmem:[#allocation5 + $0x10] sm:$0xff]  ;;  %v346_v6 = vld [vmem:[#allocation5 + $0x8] sm:$0xff]  ;;  %v345_v7 = vld [vmem:[#allocation5] sm:$0xff] }
   0xf   :  { %v337_v8 = vld [vmem:[#allocation2] sm:$0xff]  ;;  %v339_v9 = vld [vmem:[#allocation2 + $0x10] sm:$0xff]  ;;  %v338_v12 = vld [vmem:[#allocation2 + $0x8] sm:$0xff] }
  0x10   :  { %v341_v10 = vld [vmem:[#allocation2 + $0x20] sm:$0xff]  ;;  %v343_v11 = vld [vmem:[#allocation2 + $0x30] sm:$0xff]  ;;  %v340_v13 = vld [vmem:[#allocation2 + $0x18] sm:$0xff] }
  0x11   :  { %173 = vmatpush.bf16.msra.mxu0 %v351_v1  ;;  %403 = vmatpush.bf16.msra.mxu1 %v351_v1  ;;  %v342_v14 = vld [vmem:[#allocation2 + $0x28] sm:$0xff]  ;;  %v344_v15 = vld [vmem:[#allocation2 + $0x38] sm:$0xff] }
  0x12   :  { %404 = vmatpush.bf16.msra.mxu2 %v351_v1  ;;  %405 = vmatpush.bf16.msra.mxu3 %v351_v1 }
  0x15   :  { %174 = vmatpush.bf16.msra.mxu0 %v350_v2  ;;  %406 = vmatpush.bf16.msra.mxu1 %v350_v2 }
  0x16   :  { %407 = vmatpush.bf16.msra.mxu2 %v350_v2  ;;  %408 = vmatpush.bf16.msra.mxu3 %v350_v2 }
  0x19   :  { %175 = vmatpush.bf16.msra.mxu0 %v349_v3  ;;  %409 = vmatpush.bf16.msra.mxu1 %v349_v3 }
  0x1a   :  { %410 = vmatpush.bf16.msra.mxu2 %v349_v3  ;;  %411 = vmatpush.bf16.msra.mxu3 %v349_v3 }
  0x1d   :  { %176 = vmatpush.bf16.msra.mxu0 %v348_v4  ;;  %412 = vmatpush.bf16.msra.mxu1 %v348_v4 }
  0x1e   :  { %413 = vmatpush.bf16.msra.mxu2 %v348_v4  ;;  %414 = vmatpush.bf16.msra.mxu3 %v348_v4 }
  0x21   :  { %177 = vmatpush.bf16.msra.mxu0 %v347_v5  ;;  %415 = vmatpush.bf16.msra.mxu1 %v347_v5 }
  0x22   :  { %416 = vmatpush.bf16.msra.mxu2 %v347_v5  ;;  %417 = vmatpush.bf16.msra.mxu3 %v347_v5 }
  0x25   :  { %178 = vmatpush.bf16.msra.mxu0 %v346_v6  ;;  %418 = vmatpush.bf16.msra.mxu1 %v346_v6 }
  0x26   :  { %419 = vmatpush.bf16.msra.mxu2 %v346_v6  ;;  %420 = vmatpush.bf16.msra.mxu3 %v346_v6 }
  0x29   :  { %179 = vmatpush.bf16.msra.mxu0 %v345_v7  ;;  %421 = vmatpush.bf16.msra.mxu1 %v345_v7 }
  0x2a   :  { %422 = vmatpush.bf16.msra.mxu2 %v345_v7  ;;  %423 = vmatpush.bf16.msra.mxu3 %v345_v7 }
  0x2c   :  { %180 = vmatmul.bf16.vlgmr.msra.gmra.mxu0 %v337_v8  ;;  %190 = vmatmul.bf16.vlgmr.msra.gmra.mxu1 %v339_v9 }
  0x2d   :  { %200 = vmatmul.bf16.vlgmr.msra.gmra.mxu2 %v341_v10  ;;  %210 = vmatmul.bf16.vlgmr.msra.gmra.mxu3 %v343_v11 }
  0x3c   :  { %185 = vmatmul.bf16.gmra.mxu0 %v338_v12  ;;  %195 = vmatmul.bf16.gmra.mxu1 %v340_v13 }
  0x3d   :  { %205 = vmatmul.bf16.gmra.mxu2 %v342_v14  ;;  %215 = vmatmul.bf16.gmra.mxu3 %v344_v15 }
  0xa9   :  { %v181_v16 = vpop.f32.mrf.mxu0  ;;  %v191_v17 = vpop.f32.mrf.mxu1 }
  0xb0   :  { %v201_v18 = vpop.f32.mrf.mxu2  ;;  %v211_v19 = vpop.f32.mrf.mxu3 }
  0xb1   :  { %v183_v20 = vpop.f32.mrf.mxu0  ;;  %v193_v21 = vpop.f32.mrf.mxu1 }
  0xb2   :  { %v356_v22 = vpack.c.bf16 %v183_v20, %v181_v16  ;;  %v366_v23 = vpack.c.bf16 %v193_v21, %v191_v17 }
  0xb4   :  { %357 = vst [vmem:[#allocation7] sm:$0xff] %v356_v22  }
  0xb5   :  { %394 = vst [vmem:[#allocation7 + $0x10] sm:$0xff] %v366_v23  }
  0xb8   :  { %v203_v24 = vpop.f32.mrf.mxu2  ;;  %v213_v25 = vpop.f32.mrf.mxu3 }
  0xb9   :  { %v376_v26 = vpack.c.bf16 %v203_v24, %v201_v18  ;;  %v386_v27 = vpack.c.bf16 %v213_v25, %v211_v19  ;;  %v186_v28 = vpop.f32.mrf.mxu0  ;;  %v196_v29 = vpop.f32.mrf.mxu1 }
  0xbb   :  { %396 = vst [vmem:[#allocation7 + $0x20] sm:$0xff] %v376_v26  }
  0xbc   :  { %398 = vst [vmem:[#allocation7 + $0x30] sm:$0xff] %v386_v27  }
  0xc0   :  { %v206_v30 = vpop.f32.mrf.mxu2  ;;  %v216_v31 = vpop.f32.mrf.mxu3 }
  0xc1   :  { %v188_v32 = vpop.f32.mrf.mxu0  ;;  %v198_v33 = vpop.f32.mrf.mxu1 }
  0xc2   :  { %v361_v34 = vpack.c.bf16 %v188_v32, %v186_v28  ;;  %v371_v35 = vpack.c.bf16 %v198_v33, %v196_v29 }
  0xc4   :  { %393 = vst [vmem:[#allocation7 + $0x8] sm:$0xff] %v361_v34  }
  0xc5   :  { %395 = vst [vmem:[#allocation7 + $0x18] sm:$0xff] %v371_v35  }
  0xc8   :  { %v208_v36 = vpop.f32.mrf.mxu2  ;;  %v218_v37 = vpop.f32.mrf.mxu3 }
  0xc9   :  { %v381_v38 = vpack.c.bf16 %v208_v36, %v206_v30  ;;  %v391_v39 = vpack.c.bf16 %v218_v37, %v216_v31 }
  0xcb   :  { %397 = vst [vmem:[#allocation7 + $0x28] sm:$0xff] %v381_v38  }
  0xcc   :  { %399 = vst [vmem:[#allocation7 + $0x38] sm:$0xff] %v391_v39  }
  0xcd   :  { %265 = dma.vmem_to_hbm [thread:$0]  %s258_s1, 1024, %s260_s23, [#allocation4], %s508_s17, %s508_s17, %s509_s18  }
  0xce   :  { %505 = dma.done.wait [#allocation4], 1024  }
  0xcf   :  { %506 = vsyncadd [#allocation4], 4294966272 }
  0xd0   :  { %270 = vsyncpa [#allocation3], 1 }
  0xd1   :  { %271 = vsyncpa [#allocation6], 1 }
  0xd2   :  { %272 = vsyncpa [#allocation4], 1 }

</bundles_post_ra>
